<compile_context>
chip_gen: v6e
topology: v6e:2x2x1
jax: 0.10.0
libtpu: 0.0.40
codegen_flags: <defaults>
</compile_context>

<pallas_src>
import functools
import numpy as np

import jax
import jax.numpy as jnp
from jax.experimental import pallas as pl
from jax.experimental.pallas import tpu as pltpu


def _round_up(x: int, m: int) -> int:
    return -(-x // m) * m


# ----------------------------- Pallas kernel ------------------------------ #

def spe_kernel(ev_ref, v_ref, vt_ref, ci_ref, cj_ref,
               we0_ref, wa0_ref, b0_ref, we1_ref, wa1_ref, b1_ref,
               out_ref, phi_s, *, as_distance, inf_distance, unroll):
    """One grid step == GB graphs.

    ev_ref : (GB, N, 1)   f32  eigenvalues (zero padded)
    v_ref  : (GB, N, NE)  bf16 eigenvectors, rows = node i, cols = eigvec e
    vt_ref : (GB, NE, NJ) bf16 pre-transposed eigenvectors, j padded to NJ (128-mult)
    ci_ref : (GB, N, 1)   f32  per-node component id (row nodes)
    cj_ref : (GB, 1, NJ)  f32  per-node component id (col nodes), padded cols = -2
    out_ref: (GB, N, D*NJ)     lane-dense RPE: out[g, i, d*NJ + j] = rpe[g, i, j, d]
    phi_s  : (GB, N, D)   f32  VMEM scratch for DeepSets-transformed eigenvalues
    """
    gb, n, _ = v_ref.shape
    nj = vt_ref.shape[2]
    d_out = we1_ref.shape[1]
    hidden = we0_ref.shape[1]
    cdt = v_ref.dtype
    inf = jnp.float32(inf_distance)

    # ---- DeepSets, hoisted: all GB graphs at once (one MXU matmul per layer) ----
    lam = ev_ref[...]                                               # (GB, N, 1)
    lam_mean = jnp.mean(lam, axis=1, keepdims=True)                 # (GB, 1, 1)
    h = jnp.maximum(lam * we0_ref[...] + lam_mean * wa0_ref[...] + b0_ref[...], 0.0)
    h_mean = jnp.mean(h, axis=1, keepdims=True)                     # (GB, 1, H)
    phi = (jnp.dot(h.reshape(gb * n, hidden), we1_ref[...],
                   preferred_element_type=jnp.float32).reshape(gb, n, d_out)
           + jnp.dot(h_mean.reshape(gb, hidden), wa1_ref[...],
                     preferred_element_type=jnp.float32).reshape(gb, 1, d_out)
           + b1_ref[...])                                           # (GB, N, D) f32
    phi_s[...] = phi

    # ---- per-graph gram kernel: ONE wide (N,NE)x(NE,D*NJ) bf16 MXU matmul ----
    def body(g, carry):
        p = phi_s[g]                                                # (NE, D) f32
        v = v_ref[g]                                                # (N, NE) bf16
        vtf = vt_ref[g].astype(jnp.float32)                         # (NE, NJ) f32
        # M[e, d*NJ + j] = phi[e, d] * V[j, e]  (static 128-aligned lane slices,
        # single rounding to bf16 for the MXU).
        m = jnp.concatenate(
            [(vtf * p[:, dd:dd + 1]).astype(cdt) for dd in range(d_out)], axis=1)
        # K[i, d*NJ + j] = sum_e V[i,e] * V[j,e] * phi[e,d]   (f32 accumulate)
        k = jnp.dot(v, m, preferred_element_type=jnp.float32)       # (N, D*NJ)
        if as_distance:
            vf = v.astype(jnp.float32)
            diag = jnp.dot(vf * vf, p, preferred_element_type=jnp.float32)  # (N, D)
            vt2 = vtf * vtf                                                  # (NE, NJ)
            same = ci_ref[g] == cj_ref[g]          # (N,1)==(1,NJ) -> (N,NJ) bool
            parts = []
            for dd in range(d_out):
                # diag over the j (column) nodes, padded j -> 0 (masked anyway).
                diag_j = jnp.sum(vt2 * p[:, dd:dd + 1], axis=0, keepdims=True)  # (1,NJ)
                dist = (diag[:, dd:dd + 1] + diag_j
                        - 2.0 * k[:, dd * nj:(dd + 1) * nj])                    # f32
                parts.append(jnp.where(same, dist, inf).astype(out_ref.dtype))
            out_ref[g] = jnp.concatenate(parts, axis=1)             # (N, D*NJ)
        else:
            out_ref[g] = k.astype(out_ref.dtype)
        return carry

    jax.lax.fori_loop(0, gb, body, 0, unroll=unroll)


# ------------------------------- Wrappers ---------------------------------- #

def spe_dense(eigvals, eigvecs, comp_id, params, *, as_distance, inf_distance,
              out_dtype=jnp.bfloat16, compute_dtype=jnp.bfloat16,
              graphs_per_block=None):
    """Runs the Pallas kernel; returns (dense, NJ) with dense in [B_pad, N, D*NJ]."""
    we0, wa0, b0, we1, wa1, b1 = params
    B, N = eigvals.shape
    D = we1.shape[1]

    # Per-channel j-slice padded to a 128 multiple -> every store is an unmasked
    # vst and every per-channel lane slice is 128-aligned.  For production N that
    # is already a multiple of 128 this is free; here D*NJ is also a 256 multiple
    # (matches the 2x256x256 MXU on v6e/v7x).
    NJ = _round_up(N, 128)
    LW = D * NJ

    out_b = jnp.dtype(out_dtype).itemsize
    cdt_b = jnp.dtype(compute_dtype).itemsize
    per_graph_out = N * LW * out_b
    per_graph_in = N * N * cdt_b + N * NJ * cdt_b + (2 * N + NJ) * 4
    if graphs_per_block is None:
        # ~2 MiB of output per grid step (amortize ~0.35us/step, big DMA tiles) ...
        gb = max(1, (2 << 20) // max(per_graph_out, 1))
        # ... but keep 2x double-buffered blocks well under the tightest default
        # scoped-VMEM limit (16 MiB on v5e; 32 MiB default / 64 MiB physical per
        # TC on v7x), leaving headroom for the in-kernel (N, D*NJ) M/K/dist
        # temporaries.  For N >= 512 tile the D*NJ axis instead of growing GB.
        gb = min(gb, max(1, (12 << 20) // (2 * (per_graph_out + per_graph_in))))
        if B >= 2:
            gb = min(gb, B // 2)      # keep >= 2 grid steps (both v7x TensorCores)
        gb = max(1, min(gb, B))
    else:
        gb = max(1, graphs_per_block)
    GB = gb
    B_pad = _round_up(B, GB)

    ev = eigvals.astype(jnp.float32)[..., None]                      # (B, N, 1)
    v = eigvecs.astype(compute_dtype)                                # (B, N, NE)
    vt = jnp.transpose(eigvecs, (0, 2, 1)).astype(compute_dtype)     # (B, NE, N)
    vt = jnp.pad(vt, ((0, 0), (0, 0), (0, NJ - N)))                  # (B, NE, NJ)
    ci = comp_id.astype(jnp.float32)[..., None]                      # (B, N, 1)
    cj = jnp.pad(comp_id.astype(jnp.float32)[:, None, :],
                 ((0, 0), (0, 0), (0, NJ - N)), constant_values=-2.0)  # (B, 1, NJ)

    if B_pad != B:
        pad = B_pad - B
        ev = jnp.pad(ev, ((0, pad), (0, 0), (0, 0)))
        v = jnp.pad(v, ((0, pad), (0, 0), (0, 0)))
        vt = jnp.pad(vt, ((0, pad), (0, 0), (0, 0)))
        ci = jnp.pad(ci, ((0, pad), (0, 0), (0, 0)), constant_values=-1.0)
        cj = jnp.pad(cj, ((0, pad), (0, 0), (0, 0)), constant_values=-2.0)

    # Cap the in-kernel unroll: full unroll over many graphs overlaps the wide
    # (N, D*NJ) live ranges and spills vregs for realistic N.
    unroll = 1 if N >= 128 else min(GB, 4)

    kernel = functools.partial(spe_kernel,
                               as_distance=as_distance,
                               inf_distance=float(inf_distance),
                               unroll=unroll)

    dense = pl.pallas_call(
        kernel,
        out_shape=jax.ShapeDtypeStruct((B_pad, N, LW), out_dtype),
        grid_spec=pltpu.PrefetchScalarGridSpec(
            num_scalar_prefetch=0,
            grid=(B_pad // GB,),
            in_specs=[
                pl.BlockSpec((GB, N, 1), lambda b: (b, 0, 0)),      # eigvals
                pl.BlockSpec((GB, N, N), lambda b: (b, 0, 0)),      # V (i x e)
                pl.BlockSpec((GB, N, NJ), lambda b: (b, 0, 0)),     # V^T (e x j), padded
                pl.BlockSpec((GB, N, 1), lambda b: (b, 0, 0)),      # comp id (rows)
                pl.BlockSpec((GB, 1, NJ), lambda b: (b, 0, 0)),     # comp id (cols)
                pl.BlockSpec(we0.shape, lambda b: (0, 0)),
                pl.BlockSpec(wa0.shape, lambda b: (0, 0)),
                pl.BlockSpec(b0.shape, lambda b: (0, 0)),
                pl.BlockSpec(we1.shape, lambda b: (0, 0)),
                pl.BlockSpec(wa1.shape, lambda b: (0, 0)),
                pl.BlockSpec(b1.shape, lambda b: (0, 0)),
            ],
            out_specs=pl.BlockSpec((GB, N, LW), lambda b: (b, 0, 0)),
            scratch_shapes=[pltpu.VMEM((GB, N, D), jnp.float32)],
        ),
        compiler_params=pltpu.CompilerParams(
            dimension_semantics=("parallel",)),                     # megacore on v7x
    )(ev, v, vt, ci, cj, we0, wa0, b0, we1, wa1, b1)
    return dense, NJ


def spe_forward(eigvals, eigvecs, comp_id, num_nodes, params, *,
                as_distance, inf_distance, out_dtype=jnp.bfloat16):
    """Full SPELayer forward: lane-dense Pallas kernel + `from_dense_adj` gather."""
    dense, NJ = spe_dense(eigvals, eigvecs, comp_id, params,
                          as_distance=as_distance, inf_distance=inf_distance,
                          out_dtype=out_dtype)
    D = params[3].shape[1]

    # from_dense_adj: per-graph contiguous row slices + dense transpose instead of
    # a scalarized strided gather over the whole dense output (and no flat-index
    # int32 overflow risk).
    # TODO(synk): for large batches, emit the packed (n_pairs, D) output directly
    # from the kernel using scalar-prefetched per-graph row offsets.
    outs = []
    for g, n in enumerate(num_nodes):
        blk = dense[g, :n, :].reshape(n, D, NJ)[:, :, :n]            # (n, D, n)
        outs.append(jnp.transpose(blk, (0, 2, 1)).reshape(n * n, D))
    return jnp.concatenate(outs, axis=0).astype(jnp.float32)         # (n_pairs_tot, D)


# ------------------------------ Pure-JAX reference ------------------------ #

def reference_dense(eigvals, eigvecs, comp_mask, params, *, as_distance, inf_distance):
    we0, wa0, b0, we1, wa1, b1 = params
    lam = eigvals[..., None].astype(jnp.float32)                     # (B, N, 1)
    h = lam * we0 + jnp.mean(lam, axis=1, keepdims=True) * wa0 + b0
    h = jnp.maximum(h, 0.0)
    phi = (jnp.einsum('bnh,hd->bnd', h, we1)
           + jnp.einsum('bnh,hd->bnd', jnp.mean(h, axis=1, keepdims=True), wa1)
           + b1)                                                     # (B, N, D)
    K = jnp.einsum('bne,bed->bned', eigvecs, phi)
    K = jnp.einsum('bne,bNed->bnNd', eigvecs, K)                     # (B, N, N, D)
    if as_distance:
        diag = jnp.transpose(jnp.diagonal(K, axis1=1, axis2=2), (0, 2, 1))  # (B, N, D)
        dist = diag[:, None, :, :] + diag[:, :, None, :] - 2.0 * K
        cm = comp_mask[..., None]
        K = cm * dist + inf_distance * (1.0 - cm)
    return K


# --------------------------------- Main ----------------------------------- #

if __name__ == "__main__":
    # Small, module-consistent shapes.
    B, N = 2, 8            # 2 graphs, n_max = 8 nodes
    HIDDEN, OUT_DIM = 16, 4
    INF_DIST = 100.0
    AS_DISTANCE = True
    num_nodes = [6, 8]

    key = jax.random.PRNGKey(0)
    k_ev, k_vec, k0, k1, k2, k3, k4, k5 = jax.random.split(key, 8)

    # Dense-padded eigenpairs (what to_dense_adj / to_dense_batch would produce).
    eigvals = jax.random.normal(k_ev, (B, N), dtype=jnp.float32)
    eigvecs = jax.random.normal(k_vec, (B, N, N), dtype=jnp.float32)
    valid_np = np.zeros((B, N), dtype=np.float32)
    for g, n in enumerate(num_nodes):
        valid_np[g, :n] = 1.0
    valid = jnp.asarray(valid_np)
    eigvals = eigvals * valid
    eigvecs = eigvecs * valid[:, :, None] * valid[:, None, :]

    # Per-node connected-component ids (padded nodes = -1).  Graph 0 has two
    # components over its 6 valid nodes; graph 1 is a single component.
    comp_id_np = -np.ones((B, N), dtype=np.float32)
    comp_id_np[0, :3] = 0.0
    comp_id_np[0, 3:6] = 1.0
    comp_id_np[1, :8] = 0.0
    comp_id = jnp.asarray(comp_id_np)

    # Deterministic DeepSets parameters (1 -> HIDDEN -> OUT_DIM).
    params = (
        0.3 * jax.random.normal(k0, (1, HIDDEN), dtype=jnp.float32),        # we0
        0.3 * jax.random.normal(k1, (1, HIDDEN), dtype=jnp.float32),        # wa0
        0.1 * jax.random.normal(k2, (1, HIDDEN), dtype=jnp.float32),        # b0
        0.3 * jax.random.normal(k3, (HIDDEN, OUT_DIM), dtype=jnp.float32),  # we1
        0.3 * jax.random.normal(k4, (HIDDEN, OUT_DIM), dtype=jnp.float32),  # wa1
        0.1 * jax.random.normal(k5, (1, OUT_DIM), dtype=jnp.float32),       # b1
    )

    rpe_flat = spe_forward(eigvals, eigvecs, comp_id, num_nodes, params,
                           as_distance=AS_DISTANCE, inf_distance=INF_DIST)
    rpe_flat = jax.block_until_ready(rpe_flat)

    # Correctness check against a pure-JAX f32 reference (dense component mask).
    comp_mask_np = ((comp_id_np[:, :, None] == comp_id_np[:, None, :])
                    & (valid_np[:, :, None] > 0) & (valid_np[:, None, :] > 0)
                    ).astype(np.float32)
    ref_dense = reference_dense(eigvals, eigvecs, jnp.asarray(comp_mask_np), params,
                                as_distance=AS_DISTANCE, inf_distance=INF_DIST)
    pair_mask = np.zeros((B, N, N), dtype=bool)
    for g, n in enumerate(num_nodes):
        pair_mask[g, :n, :n] = True
    idx = np.nonzero(pair_mask.reshape(-1))[0]
    ref_flat = np.asarray(ref_dense).reshape(B * N * N, -1)[idx]

    assert rpe_flat.shape == (sum(n * n for n in num_nodes), OUT_DIM), rpe_flat.shape
    # bf16 MXU operands + bf16 output stream -> loosened tolerances (f32 reference).
    np.testing.assert_allclose(np.asarray(rpe_flat), ref_flat, rtol=3e-2, atol=2.5e-1)

    print("KERNEL_OK")
</pallas_src>

<mosaic_0001>
module attributes {stable_mosaic.version = 11 : i64} {
  func.func @spe_kernel(%arg0: i32, %arg1: memref<1x8x1xf32, #tpu.memory_space<vmem>>, %arg2: memref<1x8x8xbf16, #tpu.memory_space<vmem>>, %arg3: memref<1x8x128xbf16, #tpu.memory_space<vmem>>, %arg4: memref<1x8x1xf32, #tpu.memory_space<vmem>>, %arg5: memref<1x1x128xf32, #tpu.memory_space<vmem>>, %arg6: memref<1x16xf32, #tpu.memory_space<vmem>>, %arg7: memref<1x16xf32, #tpu.memory_space<vmem>>, %arg8: memref<1x16xf32, #tpu.memory_space<vmem>>, %arg9: memref<16x4xf32, #tpu.memory_space<vmem>>, %arg10: memref<16x4xf32, #tpu.memory_space<vmem>>, %arg11: memref<1x4xf32, #tpu.memory_space<vmem>>, %arg12: memref<1x8x512xbf16, #tpu.memory_space<vmem>>, %arg13: memref<1x8x4xf32, #tpu.memory_space<vmem>>) attributes {dimension_semantics = [#tpu.dimension_semantics<parallel>], iteration_bounds = array<i64: 2>, scalar_prefetch = 0 : i64, scratch_operands = 1 : i64, tpu.core_type = #tpu.core_type<tc>, window_params = [{transform_indices = @transform_0, window_bounds = array<i64: 1, 8, 1>}, {transform_indices = @transform_1, window_bounds = array<i64: 1, 8, 8>}, {transform_indices = @transform_2, window_bounds = array<i64: 1, 8, 128>}, {transform_indices = @transform_3, window_bounds = array<i64: 1, 8, 1>}, {transform_indices = @transform_4, window_bounds = array<i64: 1, 1, 128>}, {pipeline_mode = #tpu.pipeline_mode<synchronous>, transform_indices = @transform_5, window_bounds = array<i64: 1, 16>}, {pipeline_mode = #tpu.pipeline_mode<synchronous>, transform_indices = @transform_6, window_bounds = array<i64: 1, 16>}, {pipeline_mode = #tpu.pipeline_mode<synchronous>, transform_indices = @transform_7, window_bounds = array<i64: 1, 16>}, {pipeline_mode = #tpu.pipeline_mode<synchronous>, transform_indices = @transform_8, window_bounds = array<i64: 16, 4>}, {pipeline_mode = #tpu.pipeline_mode<synchronous>, transform_indices = @transform_9, window_bounds = array<i64: 16, 4>}, {pipeline_mode = #tpu.pipeline_mode<synchronous>, transform_indices = @transform_10, window_bounds = array<i64: 1, 4>}, {transform_indices = @transform_11, window_bounds = array<i64: 1, 8, 512>}]} {
    %c0 = arith.constant 0 : index
    %c0_0 = arith.constant 0 : index
    %c0_1 = arith.constant 0 : index
    %0 = vector.load %arg1[%c0, %c0_0, %c0_1] : memref<1x8x1xf32, #tpu.memory_space<vmem>>, vector<1x8x1xf32>
    %cst = arith.constant dense<0.000000e+00> : vector<1x1xf32>
    %1 = vector.multi_reduction <add>, %0, %cst [1] : vector<1x8x1xf32> to vector<1x1xf32>
    %2 = vector.shape_cast %1 : vector<1x1xf32> to vector<1x1x1xf32>
    %cst_2 = arith.constant 8.000000e+00 : f32
    %3 = vector.broadcast %cst_2 : f32 to vector<1x1x1xf32>
    %4 = arith.divf %2, %3 : vector<1x1x1xf32>
    %c0_3 = arith.constant 0 : index
    %c0_4 = arith.constant 0 : index
    %5 = vector.load %arg6[%c0_3, %c0_4] : memref<1x16xf32, #tpu.memory_space<vmem>>, vector<1x16xf32>
    %6 = vector.shape_cast %5 : vector<1x16xf32> to vector<1x1x16xf32>
    %7 = vector.broadcast %0 : vector<1x8x1xf32> to vector<1x8x16xf32>
    %8 = vector.broadcast %6 : vector<1x1x16xf32> to vector<1x8x16xf32>
    %9 = arith.mulf %7, %8 : vector<1x8x16xf32>
    %c0_5 = arith.constant 0 : index
    %c0_6 = arith.constant 0 : index
    %10 = vector.load %arg7[%c0_5, %c0_6] : memref<1x16xf32, #tpu.memory_space<vmem>>, vector<1x16xf32>
    %11 = vector.shape_cast %10 : vector<1x16xf32> to vector<1x1x16xf32>
    %12 = vector.broadcast %4 : vector<1x1x1xf32> to vector<1x1x16xf32>
    %13 = arith.mulf %12, %11 : vector<1x1x16xf32>
    %14 = vector.broadcast %13 : vector<1x1x16xf32> to vector<1x8x16xf32>
    %15 = arith.addf %9, %14 : vector<1x8x16xf32>
    %c0_7 = arith.constant 0 : index
    %c0_8 = arith.constant 0 : index
    %16 = vector.load %arg8[%c0_7, %c0_8] : memref<1x16xf32, #tpu.memory_space<vmem>>, vector<1x16xf32>
    %17 = vector.shape_cast %16 : vector<1x16xf32> to vector<1x1x16xf32>
    %18 = vector.broadcast %17 : vector<1x1x16xf32> to vector<1x8x16xf32>
    %19 = arith.addf %15, %18 : vector<1x8x16xf32>
    %cst_9 = arith.constant 0.000000e+00 : f32
    %20 = vector.broadcast %cst_9 : f32 to vector<1x8x16xf32>
    %21 = arith.maximumf %19, %20 : vector<1x8x16xf32>
    %cst_10 = arith.constant dense<0.000000e+00> : vector<1x16xf32>
    %22 = vector.multi_reduction <add>, %21, %cst_10 [1] : vector<1x8x16xf32> to vector<1x16xf32>
    %23 = vector.shape_cast %22 : vector<1x16xf32> to vector<1x1x16xf32>
    %cst_11 = arith.constant 8.000000e+00 : f32
    %24 = vector.broadcast %cst_11 : f32 to vector<1x1x16xf32>
    %25 = arith.divf %23, %24 : vector<1x1x16xf32>
    %26 = vector.shape_cast %21 : vector<1x8x16xf32> to vector<8x16xf32>
    %c0_12 = arith.constant 0 : index
    %c0_13 = arith.constant 0 : index
    %27 = vector.load %arg9[%c0_12, %c0_13] : memref<16x4xf32, #tpu.memory_space<vmem>>, vector<16x4xf32>
    %cst_14 = arith.constant dense<0.000000e+00> : vector<8x4xf32>
    %28 = tpu.matmul %26, %27, %cst_14 {dimension_numbers = #tpu.dot_dimension_numbers<[1], [0], [0], [1], [0, 0, 1, 1], [], []>} : vector<8x16xf32>, vector<16x4xf32>, vector<8x4xf32> -> vector<8x4xf32>
    %29 = vector.shape_cast %28 : vector<8x4xf32> to vector<1x8x4xf32>
    %30 = vector.shape_cast %25 : vector<1x1x16xf32> to vector<1x16xf32>
    %c0_15 = arith.constant 0 : index
    %c0_16 = arith.constant 0 : index
    %31 = vector.load %arg10[%c0_15, %c0_16] : memref<16x4xf32, #tpu.memory_space<vmem>>, vector<16x4xf32>
    %cst_17 = arith.constant dense<0.000000e+00> : vector<1x4xf32>
    %32 = tpu.matmul %30, %31, %cst_17 {dimension_numbers = #tpu.dot_dimension_numbers<[1], [0], [0], [1], [0, 0, 1, 1], [], []>} : vector<1x16xf32>, vector<16x4xf32>, vector<1x4xf32> -> vector<1x4xf32>
    %33 = vector.shape_cast %32 : vector<1x4xf32> to vector<1x1x4xf32>
    %34 = vector.broadcast %33 : vector<1x1x4xf32> to vector<1x8x4xf32>
    %35 = arith.addf %29, %34 : vector<1x8x4xf32>
    %c0_18 = arith.constant 0 : index
    %c0_19 = arith.constant 0 : index
    %36 = vector.load %arg11[%c0_18, %c0_19] : memref<1x4xf32, #tpu.memory_space<vmem>>, vector<1x4xf32>
    %37 = vector.shape_cast %36 : vector<1x4xf32> to vector<1x1x4xf32>
    %38 = vector.broadcast %37 : vector<1x1x4xf32> to vector<1x8x4xf32>
    %39 = arith.addf %35, %38 : vector<1x8x4xf32>
    %c0_20 = arith.constant 0 : index
    %c0_21 = arith.constant 0 : index
    %c0_22 = arith.constant 0 : index
    %40 = vector.load %arg13[%c0_20, %c0_21, %c0_22] : memref<1x8x4xf32, #tpu.memory_space<vmem>>, vector<1x8x4xf32>
    tpu.vector_store %arg13[%c0_20, %c0_21, %c0_22], %39 {strides = array<i32>} : memref<1x8x4xf32, #tpu.memory_space<vmem>>, vector<1x8x4xf32>,
    %cst_23 = arith.constant 1.000000e+02 : f32
    %c0_i32 = arith.constant 0 : i32
    %41 = arith.index_cast %c0_i32 : i32 to index
    %c0_24 = arith.constant 0 : index
    %c0_25 = arith.constant 0 : index
    %42 = vector.load %arg13[%41, %c0_24, %c0_25] : memref<1x8x4xf32, #tpu.memory_space<vmem>>, vector<1x8x4xf32>
    %43 = vector.shape_cast %42 : vector<1x8x4xf32> to vector<8x4xf32>
    %44 = arith.index_cast %c0_i32 : i32 to index
    %c0_26 = arith.constant 0 : index
    %c0_27 = arith.constant 0 : index
    %45 = vector.load %arg2[%44, %c0_26, %c0_27] : memref<1x8x8xbf16, #tpu.memory_space<vmem>>, vector<1x8x8xbf16>
    %46 = vector.shape_cast %45 : vector<1x8x8xbf16> to vector<8x8xbf16>
    %47 = arith.index_cast %c0_i32 : i32 to index
    %c0_28 = arith.constant 0 : index
    %c0_29 = arith.constant 0 : index
    %48 = vector.load %arg3[%47, %c0_28, %c0_29] : memref<1x8x128xbf16, #tpu.memory_space<vmem>>, vector<1x8x128xbf16>
    %49 = vector.shape_cast %48 : vector<1x8x128xbf16> to vector<8x128xbf16>
    %50 = arith.extf %49 : vector<8x128xbf16> to vector<8x128xf32>
    %51 = vector.extract_strided_slice %43 {offsets = [0, 0], sizes = [8, 1], strides = [1, 1]} : vector<8x4xf32> to vector<8x1xf32>
    %52 = vector.broadcast %51 : vector<8x1xf32> to vector<8x128xf32>
    %53 = arith.mulf %50, %52 : vector<8x128xf32>
    %54 = arith.truncf %53 : vector<8x128xf32> to vector<8x128xbf16>
    %55 = vector.extract_strided_slice %43 {offsets = [0, 1], sizes = [8, 1], strides = [1, 1]} : vector<8x4xf32> to vector<8x1xf32>
    %56 = vector.broadcast %55 : vector<8x1xf32> to vector<8x128xf32>
    %57 = arith.mulf %50, %56 : vector<8x128xf32>
    %58 = arith.truncf %57 : vector<8x128xf32> to vector<8x128xbf16>
    %59 = vector.extract_strided_slice %43 {offsets = [0, 2], sizes = [8, 1], strides = [1, 1]} : vector<8x4xf32> to vector<8x1xf32>
    %60 = vector.broadcast %59 : vector<8x1xf32> to vector<8x128xf32>
    %61 = arith.mulf %50, %60 : vector<8x128xf32>
    %62 = arith.truncf %61 : vector<8x128xf32> to vector<8x128xbf16>
    %63 = vector.extract_strided_slice %43 {offsets = [0, 3], sizes = [8, 1], strides = [1, 1]} : vector<8x4xf32> to vector<8x1xf32>
    %64 = vector.broadcast %63 : vector<8x1xf32> to vector<8x128xf32>
    %65 = arith.mulf %50, %64 : vector<8x128xf32>
    %66 = arith.truncf %65 : vector<8x128xf32> to vector<8x128xbf16>
    %67 = tpu.concatenate %54, %58, %62, %66 in 1 : vector<8x128xbf16>, vector<8x128xbf16>, vector<8x128xbf16>, vector<8x128xbf16> -> vector<8x512xbf16>
    %cst_30 = arith.constant dense<0.000000e+00> : vector<8x512xf32>
    %68 = tpu.matmul %46, %67, %cst_30 {dimension_numbers = #tpu.dot_dimension_numbers<[1], [0], [0], [1], [0, 0, 1, 1], [], []>} : vector<8x8xbf16>, vector<8x512xbf16>, vector<8x512xf32> -> vector<8x512xf32>
    %69 = arith.extf %46 : vector<8x8xbf16> to vector<8x8xf32>
    %70 = arith.mulf %69, %69 : vector<8x8xf32>
    %cst_31 = arith.constant dense<0.000000e+00> : vector<8x4xf32>
    %71 = tpu.matmul %70, %43, %cst_31 {dimension_numbers = #tpu.dot_dimension_numbers<[1], [0], [0], [1], [0, 0, 1, 1], [], []>} : vector<8x8xf32>, vector<8x4xf32>, vector<8x4xf32> -> vector<8x4xf32>
    %72 = arith.mulf %50, %50 : vector<8x128xf32>
    %73 = arith.index_cast %c0_i32 : i32 to index
    %c0_32 = arith.constant 0 : index
    %c0_33 = arith.constant 0 : index
    %74 = vector.load %arg4[%73, %c0_32, %c0_33] : memref<1x8x1xf32, #tpu.memory_space<vmem>>, vector<1x8x1xf32>
    %75 = vector.shape_cast %74 : vector<1x8x1xf32> to vector<8x1xf32>
    %76 = arith.index_cast %c0_i32 : i32 to index
    %c0_34 = arith.constant 0 : index
    %c0_35 = arith.constant 0 : index
    %77 = vector.load %arg5[%76, %c0_34, %c0_35] : memref<1x1x128xf32, #tpu.memory_space<vmem>>, vector<1x1x128xf32>
    %78 = vector.shape_cast %77 : vector<1x1x128xf32> to vector<1x128xf32>
    %79 = vector.broadcast %75 : vector<8x1xf32> to vector<8x128xf32>
    %80 = vector.broadcast %78 : vector<1x128xf32> to vector<8x128xf32>
    %81 = arith.cmpf oeq, %79, %80 : vector<8x128xf32>
    %82 = vector.extract_strided_slice %43 {offsets = [0, 0], sizes = [8, 1], strides = [1, 1]} : vector<8x4xf32> to vector<8x1xf32>
    %83 = vector.broadcast %82 : vector<8x1xf32> to vector<8x128xf32>
    %84 = arith.mulf %72, %83 : vector<8x128xf32>
    %cst_36 = arith.constant dense<0.000000e+00> : vector<128xf32>
    %85 = vector.multi_reduction <add>, %84, %cst_36 [0] : vector<8x128xf32> to vector<128xf32>
    %86 = vector.shape_cast %85 : vector<128xf32> to vector<1x128xf32>
    %87 = vector.extract_strided_slice %71 {offsets = [0, 0], sizes = [8, 1], strides = [1, 1]} : vector<8x4xf32> to vector<8x1xf32>
    %88 = vector.broadcast %87 : vector<8x1xf32> to vector<8x128xf32>
    %89 = vector.broadcast %86 : vector<1x128xf32> to vector<8x128xf32>
    %90 = arith.addf %88, %89 : vector<8x128xf32>
    %91 = vector.extract_strided_slice %68 {offsets = [0, 0], sizes = [8, 128], strides = [1, 1]} : vector<8x512xf32> to vector<8x128xf32>
    %cst_37 = arith.constant 2.000000e+00 : f32
    %92 = vector.broadcast %cst_37 : f32 to vector<8x128xf32>
    %93 = arith.mulf %92, %91 : vector<8x128xf32>
    %94 = arith.subf %90, %93 : vector<8x128xf32>
    %95 = vector.broadcast %cst_23 : f32 to vector<8x128xf32>
    %96 = arith.select %81, %94, %95 : vector<8x128xi1>, vector<8x128xf32>
    %97 = arith.truncf %96 : vector<8x128xf32> to vector<8x128xbf16>
    %98 = vector.extract_strided_slice %43 {offsets = [0, 1], sizes = [8, 1], strides = [1, 1]} : vector<8x4xf32> to vector<8x1xf32>
    %99 = vector.broadcast %98 : vector<8x1xf32> to vector<8x128xf32>
    %100 = arith.mulf %72, %99 : vector<8x128xf32>
    %cst_38 = arith.constant dense<0.000000e+00> : vector<128xf32>
    %101 = vector.multi_reduction <add>, %100, %cst_38 [0] : vector<8x128xf32> to vector<128xf32>
    %102 = vector.shape_cast %101 : vector<128xf32> to vector<1x128xf32>
    %103 = vector.extract_strided_slice %71 {offsets = [0, 1], sizes = [8, 1], strides = [1, 1]} : vector<8x4xf32> to vector<8x1xf32>
    %104 = vector.broadcast %103 : vector<8x1xf32> to vector<8x128xf32>
    %105 = vector.broadcast %102 : vector<1x128xf32> to vector<8x128xf32>
    %106 = arith.addf %104, %105 : vector<8x128xf32>
    %107 = vector.extract_strided_slice %68 {offsets = [0, 128], sizes = [8, 128], strides = [1, 1]} : vector<8x512xf32> to vector<8x128xf32>
    %cst_39 = arith.constant 2.000000e+00 : f32
    %108 = vector.broadcast %cst_39 : f32 to vector<8x128xf32>
    %109 = arith.mulf %108, %107 : vector<8x128xf32>
    %110 = arith.subf %106, %109 : vector<8x128xf32>
    %111 = vector.broadcast %cst_23 : f32 to vector<8x128xf32>
    %112 = arith.select %81, %110, %111 : vector<8x128xi1>, vector<8x128xf32>
    %113 = arith.truncf %112 : vector<8x128xf32> to vector<8x128xbf16>
    %114 = vector.extract_strided_slice %43 {offsets = [0, 2], sizes = [8, 1], strides = [1, 1]} : vector<8x4xf32> to vector<8x1xf32>
    %115 = vector.broadcast %114 : vector<8x1xf32> to vector<8x128xf32>
    %116 = arith.mulf %72, %115 : vector<8x128xf32>
    %cst_40 = arith.constant dense<0.000000e+00> : vector<128xf32>
    %117 = vector.multi_reduction <add>, %116, %cst_40 [0] : vector<8x128xf32> to vector<128xf32>
    %118 = vector.shape_cast %117 : vector<128xf32> to vector<1x128xf32>
    %119 = vector.extract_strided_slice %71 {offsets = [0, 2], sizes = [8, 1], strides = [1, 1]} : vector<8x4xf32> to vector<8x1xf32>
    %120 = vector.broadcast %119 : vector<8x1xf32> to vector<8x128xf32>
    %121 = vector.broadcast %118 : vector<1x128xf32> to vector<8x128xf32>
    %122 = arith.addf %120, %121 : vector<8x128xf32>
    %123 = vector.extract_strided_slice %68 {offsets = [0, 256], sizes = [8, 128], strides = [1, 1]} : vector<8x512xf32> to vector<8x128xf32>
    %cst_41 = arith.constant 2.000000e+00 : f32
    %124 = vector.broadcast %cst_41 : f32 to vector<8x128xf32>
    %125 = arith.mulf %124, %123 : vector<8x128xf32>
    %126 = arith.subf %122, %125 : vector<8x128xf32>
    %127 = vector.broadcast %cst_23 : f32 to vector<8x128xf32>
    %128 = arith.select %81, %126, %127 : vector<8x128xi1>, vector<8x128xf32>
    %129 = arith.truncf %128 : vector<8x128xf32> to vector<8x128xbf16>
    %130 = vector.extract_strided_slice %43 {offsets = [0, 3], sizes = [8, 1], strides = [1, 1]} : vector<8x4xf32> to vector<8x1xf32>
    %131 = vector.broadcast %130 : vector<8x1xf32> to vector<8x128xf32>
    %132 = arith.mulf %72, %131 : vector<8x128xf32>
    %cst_42 = arith.constant dense<0.000000e+00> : vector<128xf32>
    %133 = vector.multi_reduction <add>, %132, %cst_42 [0] : vector<8x128xf32> to vector<128xf32>
    %134 = vector.shape_cast %133 : vector<128xf32> to vector<1x128xf32>
    %135 = vector.extract_strided_slice %71 {offsets = [0, 3], sizes = [8, 1], strides = [1, 1]} : vector<8x4xf32> to vector<8x1xf32>
    %136 = vector.broadcast %135 : vector<8x1xf32> to vector<8x128xf32>
    %137 = vector.broadcast %134 : vector<1x128xf32> to vector<8x128xf32>
    %138 = arith.addf %136, %137 : vector<8x128xf32>
    %139 = vector.extract_strided_slice %68 {offsets = [0, 384], sizes = [8, 128], strides = [1, 1]} : vector<8x512xf32> to vector<8x128xf32>
    %cst_43 = arith.constant 2.000000e+00 : f32
    %140 = vector.broadcast %cst_43 : f32 to vector<8x128xf32>
    %141 = arith.mulf %140, %139 : vector<8x128xf32>
    %142 = arith.subf %138, %141 : vector<8x128xf32>
    %143 = vector.broadcast %cst_23 : f32 to vector<8x128xf32>
    %144 = arith.select %81, %142, %143 : vector<8x128xi1>, vector<8x128xf32>
    %145 = arith.truncf %144 : vector<8x128xf32> to vector<8x128xbf16>
    %146 = tpu.concatenate %97, %113, %129, %145 in 1 : vector<8x128xbf16>, vector<8x128xbf16>, vector<8x128xbf16>, vector<8x128xbf16> -> vector<8x512xbf16>
    %147 = arith.index_cast %c0_i32 : i32 to index
    %c0_44 = arith.constant 0 : index
    %c0_45 = arith.constant 0 : index
    %148 = vector.load %arg12[%147, %c0_44, %c0_45] : memref<1x8x512xbf16, #tpu.memory_space<vmem>>, vector<1x8x512xbf16>
    %149 = vector.shape_cast %148 : vector<1x8x512xbf16> to vector<8x512xbf16>
    %150 = vector.shape_cast %146 : vector<8x512xbf16> to vector<1x8x512xbf16>
    tpu.vector_store %arg12[%147, %c0_44, %c0_45], %150 {strides = array<i32>} : memref<1x8x512xbf16, #tpu.memory_space<vmem>>, vector<1x8x512xbf16>,
    %c1_i32 = arith.constant 1 : i32
    return
  }
  func.func @transform_0(%arg0: i32) -> (i32, i32, i32) {
    %c0_i32 = arith.constant 0 : i32
    %c0_i32_0 = arith.constant 0 : i32
    %c0_i32_1 = arith.constant 0 : i32
    return %arg0, %c0_i32, %c0_i32_0 : i32, i32, i32
  }
  func.func @transform_1(%arg0: i32) -> (i32, i32, i32) {
    %c0_i32 = arith.constant 0 : i32
    %c0_i32_0 = arith.constant 0 : i32
    %c0_i32_1 = arith.constant 0 : i32
    return %arg0, %c0_i32, %c0_i32_0 : i32, i32, i32
  }
  func.func @transform_2(%arg0: i32) -> (i32, i32, i32) {
    %c0_i32 = arith.constant 0 : i32
    %c0_i32_0 = arith.constant 0 : i32
    %c0_i32_1 = arith.constant 0 : i32
    return %arg0, %c0_i32, %c0_i32_0 : i32, i32, i32
  }
  func.func @transform_3(%arg0: i32) -> (i32, i32, i32) {
    %c0_i32 = arith.constant 0 : i32
    %c0_i32_0 = arith.constant 0 : i32
    %c0_i32_1 = arith.constant 0 : i32
    return %arg0, %c0_i32, %c0_i32_0 : i32, i32, i32
  }
  func.func @transform_4(%arg0: i32) -> (i32, i32, i32) {
    %c0_i32 = arith.constant 0 : i32
    %c0_i32_0 = arith.constant 0 : i32
    %c0_i32_1 = arith.constant 0 : i32
    return %arg0, %c0_i32, %c0_i32_0 : i32, i32, i32
  }
  func.func @transform_5(%arg0: i32) -> (i32, i32) {
    %c0_i32 = arith.constant 0 : i32
    %c0_i32_0 = arith.constant 0 : i32
    %c0_i32_1 = arith.constant 0 : i32
    return %c0_i32, %c0_i32_0 : i32, i32
  }
  func.func @transform_6(%arg0: i32) -> (i32, i32) {
    %c0_i32 = arith.constant 0 : i32
    %c0_i32_0 = arith.constant 0 : i32
    %c0_i32_1 = arith.constant 0 : i32
    return %c0_i32, %c0_i32_0 : i32, i32
  }
  func.func @transform_7(%arg0: i32) -> (i32, i32) {
    %c0_i32 = arith.constant 0 : i32
    %c0_i32_0 = arith.constant 0 : i32
    %c0_i32_1 = arith.constant 0 : i32
    return %c0_i32, %c0_i32_0 : i32, i32
  }
  func.func @transform_8(%arg0: i32) -> (i32, i32) {
    %c0_i32 = arith.constant 0 : i32
    %c0_i32_0 = arith.constant 0 : i32
    %c0_i32_1 = arith.constant 0 : i32
    return %c0_i32, %c0_i32_0 : i32, i32
  }
  func.func @transform_9(%arg0: i32) -> (i32, i32) {
    %c0_i32 = arith.constant 0 : i32
    %c0_i32_0 = arith.constant 0 : i32
    %c0_i32_1 = arith.constant 0 : i32
    return %c0_i32, %c0_i32_0 : i32, i32
  }
  func.func @transform_10(%arg0: i32) -> (i32, i32) {
    %c0_i32 = arith.constant 0 : i32
    %c0_i32_0 = arith.constant 0 : i32
    %c0_i32_1 = arith.constant 0 : i32
    return %c0_i32, %c0_i32_0 : i32, i32
  }
  func.func @transform_11(%arg0: i32) -> (i32, i32, i32) {
    %c0_i32 = arith.constant 0 : i32
    %c0_i32_0 = arith.constant 0 : i32
    %c0_i32_1 = arith.constant 0 : i32
    return %arg0, %c0_i32, %c0_i32_0 : i32, i32, i32
  }
}

</mosaic_0001>

<bundles_post_ra>
// kernel: tpu_custom_call.1
= control target key start
LH: loop header
LB: loop body
LE: loop exit
PB: predicated region body
PF: predicated region fallthrough
CT: control target
= control target key end

     0   :  { %s1493_s0 = inlined_call_operand.vmem [shape: f32[2,8,1], index: 0, kind: input, shape index: {}]   ;;  %s1494_s1 = inlined_call_operand.vmem [shape: bf16[2,8,8], index: 1, kind: input, shape index: {}]   ;;  %s1495_s2 = inlined_call_operand.vmem [shape: bf16[2,8,128], index: 2, kind: input, shape index: {}]   ;;  %s1496_s3 = inlined_call_operand.vmem [shape: f32[2,8,1], index: 3, kind: input, shape index: {}]   ;;  %s1497_s4 = inlined_call_operand.vmem [shape: f32[2,1,128], index: 4, kind: input, shape index: {}]   ;;  %s1498_s5 = inlined_call_operand.vmem [shape: f32[1,16], index: 5, kind: input, shape index: {}]   ;;  %s1499_s6 = inlined_call_operand.vmem [shape: f32[1,16], index: 6, kind: input, shape index: {}]   ;;  %s1500_s7 = inlined_call_operand.vmem [shape: f32[1,16], index: 7, kind: input, shape index: {}]   ;;  %s1501_s8 = inlined_call_operand.vmem [shape: f32[16,4], index: 8, kind: input, shape index: {}]   ;;  %s1502_s9 = inlined_call_operand.vmem [shape: f32[16,4], index: 9, kind: input, shape index: {}]   ;;  %s1503_s10 = inlined_call_operand.vmem [shape: f32[1,4], index: 10, kind: input, shape index: {}]   ;;  %s1504_s11 = inlined_call_operand.hbm [shape: bf16[2,8,512], index: 11, kind: output, shape index: {}]  }
   0x1   :  { %1505 = sst [smem:[#allocation6_spill]] %s1493_s0 }
   0x2   :  { %1506 = sst [smem:[#allocation7_spill]] %s1494_s1 }
   0x3   :  { %16 = vsyncpa [#allocation4], 0 }
   0x4   :  { %18 = vsyncpa [#allocation4 + $0x1], 0  ;;  %s1327_s17 = smov 0   ;;  %s1329_s18 = smov 0  }
   0x5   :  { %s1331_s19 = smov 0   ;;  %s1333_s20 = smov 0  }
   0x6 LB: > { %s1348_s21 = sadd.s32 4294967295, %s1258_s20   ;;  %s1085_s22 = sadd.s32 4294967294, %s1258_s20   ;;  %s1258_s20 = sphi %s1333_s20, %s1514_s20   ;;  %s1254_s19 = sphi %s1331_s19, %s1513_s19   ;;  %s1250_s18 = sphi %s1329_s18, %s1512_s18   ;;  %s1246_s17 = sphi %s1327_s17, %s1511_s17  }
   0x7   : > { %s1352_s23 = sadd.s32 1, %s1258_s20   ;;  %s287_s24 = sadd.s32 1, %s1254_s19 }
   0x8   : > { %s284_s25 = ssub.s32 %s1258_s20, %s1352_s23  ;;  %p297_p0 = scmp.ne.s32.totalorder %s1254_s19, %s1250_s18 }
   0x9   : > { %p285_p1 = scmp.eq.s32.totalorder %s284_s25, 0  ;;  %p298_p2 = scmp.eq.s32.totalorder %s1348_s21, 1 }
   0xa   : > { %p303_p3 = scmp.ne.s32.totalorder %s1250_s18, %s1246_s17  ;;  %p304_p4 = scmp.eq.s32.totalorder %s1085_s22, 1 }
   0xb   : > { %s1363_s26 = scalar_select %p285_p1, %s1254_s19, %s287_s24  }
   0xc   : > { %p1365_p5 = por %p298_p2, %p297_p0  ;;  %p1369_p6 = por %p304_p4, %p303_p3 }
   0xd   : > { %p1088_p7 = scmp.ge.s32.totalorder %s1258_s20, 1  ;;  %p374_p8 = scmp.lt.s32.totalorder %s1258_s20, 3 }
   0xf   : > { %p375_p9 = pnand %p1088_p7, %p374_p8 }
  0x10   : > { %p428_p10 = scmp.lt.s32.totalorder (!%p375_p9), %s1348_s21, 1  ;;  %s1509_s0 = sld [smem:[#allocation6_spill]] (!%p375_p9) }
  0x11   : > { %378 = sbr.rel (%p375_p9) target bundleno = 892 (0x37c), region = 64  ;;  %s1510_s1 = sld [smem:[#allocation7_spill]] (!%p375_p9) }
  0x12   : > { %s425_s25 = sand.u32 (!%p375_p9), 1, %s1250_s18  }
  0x13   : > { %s1089_s12 = sshll.u32 (!%p375_p9), %s425_s25, 4  ;;  %s967_s22 = scalar_lea.sflag (!%p375_p9), [#allocation4], %s425_s25 }
  0x16   : > { %v1260_v0 = vmov 0   ;;  %s1379_s29 = scalar_select %p428_p10, %s1348_s21, 1  ;;  %vm449_vm0 = vcmask 7168   ;;  %v1261_v10 = vmov 0.0   ;;  %v505_v11 = vld [vmem:[%s1501_s8 + $0x8] sm:$0xff]  ;;  %v504_v12 = vld [vmem:[%s1501_s8] sm:$0xff]  ;;  %v480_v15 = vlaneseq }
  0x17   : > { %1187 = vset.pattern.permute.xlu0 %v1260_v0  ;;  %1188 = vset.pattern.permute.xlu1 %v1260_v0  ;;  %vm1262_vm1 = vmmov 0   ;;  %v580_v13 = vld [vmem:[%s1502_s9 + $0x8] sm:$0xff]  ;;  %v579_v14 = vld [vmem:[%s1502_s9] sm:$0xff]  ;;  %vm495_vm2 = vcmask 130048   ;;  %v1263_v37 = vmov 2   ;;  %vm667_vm3 = vcmask 31744  }
  0x18   : > { %s1090_s30 = sshll.u32 %s1379_s29, 3  ;;  %1123 = vmatprep.subr.mxu0 %v1261_v10  ;;  %1130 = vmatprep.subr.mxu1 %v1261_v10  ;;  %v481_v16 = vshrl.u32 %v480_v15, 7  ;;  %v472_v17 = vld [vmem:[%s1499_s6] sm:$0x1]  ;;  %v1264_v47 = vmov 1   ;;  %v1265_v48 = vmov 3  }
  0x19   : > { %s431_s14 = scalar_lea.vmem %s1509_s0, %s1090_s30  ;;  %1124 = vmatpush3.msra.mxu0 %v505_v11  ;;  %1127 = vmatprep.mubr.msk.f32.mxu0 %vm1262_vm1, %v1261_v10  ;;  %v1094_v21 = vld [vmem:[%s1498_s5] ss:$0 sm:$0xff]  ;;  %s1091_s15 = sshll.u32 %s1379_s29, 2  ;;  %vm702_vm4 = vcmask 1043456   ;;  %vm698_vm5 = vcmask 64512  }
  0x1a   : > { %v448_v1 = vld [vmem:[%s431_s14] sm:$0xff]  ;;  %1125 = vmatprep.subr.mxu0 %v1261_v10  ;;  %1134 = vmatprep.mubr.msk.f32.mxu1 %vm1262_vm1, %v1261_v10  ;;  %v482_v19 = vsub.s32 0, %v481_v16  ;;  %s439_s24 = scalar_lea.vmem %s1495_s2, %s1091_s15  ;;  %s435_s13 = scalar_lea.vmem %s1510_s1, %s1091_s15 }
  0x1b   : > { %v450_v2 = vsel %vm449_vm0, %v448_v1, 0.0  ;;  %1126 = vmatpush3.msra.mxu0 %v504_v12  ;;  %1131 = vmatpush3.msra.mxu1 %v580_v13  ;;  %v1095_v25 = vld [vmem:[%s1500_s7] ss:$0 sm:$0xff]  ;;  %s443_s16 = scalar_lea.vmem %s1496_s3, %s1090_s30 }
  0x1c   : > { %v451_v3 = vrot.slane %v450_v2, 4  ;;  %1132 = vmatprep.subr.mxu1 %v1261_v10  ;;  %v1098_v42 = vld [vmem:[%s1503_s10] ss:$0 sm:$0xff] }
  0x1d   : > { %1133 = vmatpush3.msra.mxu1 %v579_v14  ;;  %v671_v49 = vld [vmem:[%s439_s24] sm:$0xf]  ;;  %s446_s24 = scalar_lea.vmem %s1497_s4, %s1379_s29  ;;  %s427_s29 = scalar_lea.vmem [#allocation3], %s1089_s12 }
  0x1e   : > { %v452_v4 = vadd.f32 %v451_v3, %v450_v2  ;;  %v672_v50 = vunpack.c.l.bf16 %v671_v49  ;;  %v670_v63 = vld [vmem:[%s435_s13] sm:$0xf]  ;;  %s1114_s13 = sshll.u32 %s1348_s21, 8  ;;  %s981_s14 = sshll.u32 %s427_s29, 4  ;;  %s982_s14 = int_to_ptr.vmem [resolvable:$true] %s981_s14 }
  0x1f   : > { %v797_v2 = vunpack.c.l.bf16 %v670_v63  ;;  %v873_v14 = vld [vmem:[%s443_s16] sm:$0xff]  ;;  %s979_s30 = scalar_lea.hbm %s1504_s11, %s1114_s13  ;;  %s1266_s21 = smov [#allocation3]  }
  0x20   : > { %v453_v5 = vrot.slane %v452_v4, 2  ;;  %v872_v16 = vmul.f32 %v672_v50, %v672_v50  ;;  %v1104_v49 = vld [vmem:[%s446_s24] ss:$0 sm:$0xff]  ;;  %s1198_s24 = scalar_lea.vmem %s982_s14, 256  ;;  %s1202_s12 = sshll.u32 %s1266_s21, 4  ;;  %s1203_s12 = int_to_ptr.vmem [resolvable:$false] %s1202_s12 }
  0x21   : > { %p1199_p11 = scmp.ne.s32.totalorder %s982_s14, %s1198_s24  ;;  %s1204_s0 = scalar_lea.vmem %s1203_s12, 512 }
  0x22   : > { %v454_v6 = vadd.f32 %v453_v5, %v452_v4  ;;  %v798_v4 = vmul.f32 %v797_v2, %v797_v2  ;;  %p1205_p0 = scmp.lt.s32.totalorder %s982_s14, %s1203_s12  ;;  %p1206_p1 = scmp.lt.s32.totalorder %s1204_s0, %s1198_s24 }
  0x23   : > { %p1200_p12 = pnand %p1199_p11, %p1365_p5 }
  0x24   : > { %v455_v7 = vrot.slane %v454_v6, 1  ;;  %p1207_p2 = por %p1206_p1, %p1205_p0 }
  0x25   : > { %p1201_p13 = pneg %p1200_p12 }
  0x26   : > { %v456_v8 = vadd.f32 %v455_v7, %v454_v6 }
  0x27   : > { %p1208_p3 = pnand %p1207_p2, %p1201_p13 }
  0x28   : > { %v458_v9 = vmul.f32 0.125, %v456_v8 }
  0x2a   : > { %475 = vperm.xlu0 %1187, %v458_v9  }
  0x2e   : > { %462 = vperm.xlu0 %1187, %v448_v1  }
  0x32   : > { %1190 = vset.pattern.permute.xlu0 %v1263_v37 }
  0xa5   : > { %v476_v18 = vpop.permute.xlu0 %475 }
  0xa6   : > { %v478_v20 = vmul.f32 %v476_v18, %v472_v17 }
  0xa8   : > { %v483_v23 = vrot.slane %v478_v20, %v482_v19 }
  0xa9   : > { %v463_v22 = vpop.permute.xlu0 %462 }
  0xaa   : > { %v471_v24 = vmul.f32 %v1094_v21, %v463_v22 }
  0xac   : > { %v485_v26 = vadd.f32 %v483_v23, %v471_v24 }
  0xae   : > { %v493_v27 = vadd.f32 %v1095_v25, %v485_v26 }
  0xb0   : > { %v494_v28 = vmax.f32 %v493_v27, 0.0 }
  0xb2   : > { %v496_v29 = vsel %vm495_vm2, %v494_v28, 0.0  ;;  %1128 = vmatmul.mubr.msk.f32.vlgmr.msra.gmra.mxu0 %vm495_vm2, %v494_v28 }
  0xb3   : > { %v497_v30 = vrot.slane %v496_v29, 4  ;;  %747 = vmatprep.mubr.bf16.mxu0 %v1260_v0 }
  0xb5   : > { %v498_v31 = vadd.f32 %v497_v30, %v496_v29 }
  0xb7   : > { %v499_v32 = vrot.slane %v498_v31, 2 }
  0xb9   : > { %v500_v33 = vadd.f32 %v499_v32, %v498_v31 }
  0xbb   : > { %v501_v34 = vrot.slane %v500_v33, 1 }
  0xbd   : > { %v502_v35 = vadd.f32 %v501_v34, %v500_v33 }
  0xbf   : > { %v503_v36 = vmul.f32 0.125, %v502_v35 }
  0xc1   : > { %1135 = vmatmul.mubr.msk.f32.vlgmr.msra.gmra.mxu1 %vm495_vm2, %v503_v36 }
  0xc2   : > { %788 = vmatprep.mubr.bf16.mxu1 %v1260_v0 }
 0x172   : > { %v575_v38 = vpop.f32.mrf.mxu0 }
 0x174   : > { %v1129_v39 = vpop.f32.mrf.mxu0 }
 0x181   : > { %v650_v40 = vpop.f32.mrf.mxu1 }
 0x182   : > { %v657_v41 = vrot.slane %v650_v40, %v482_v19 }
 0x183   : > { %v1136_v43 = vpop.f32.mrf.mxu1 }
 0x184   : > { %v658_v44 = vadd.f32 %v657_v41, %v575_v38 }
 0x186   : > { %v666_v45 = vadd.f32 %v1098_v42, %v658_v44 }
 0x188   : > { %668 = vst.msk [vmem:[#allocation2] sm:$0xff] %vm667_vm3, %v666_v45 }
 0x18f   : > { %v669_v46 = vld [vmem:[#allocation2] sm:$0xff] }
 0x190   : > { %687 = vperm.xlu0 %1190, %v669_v46   ;;  %675 = vperm.xlu1 %1188, %v669_v46  }
 0x194   : > { %1189 = vset.pattern.permute.xlu1 %v1264_v47  ;;  %1193 = vset.pattern.permute.xlu0 %v1264_v47 }
 0x195   : > { %681 = vperm.xlu1 %1189, %v669_v46  }
 0x199   : > { %1191 = vset.pattern.permute.xlu1 %v1265_v48 }
 0x19a   : > { %693 = vperm.xlu1 %1191, %v669_v46  }
 0x19e   : > { %1192 = vset.pattern.permute.xlu1 %v1260_v0 }
 0x20b   : > { %v676_v51 = vpop.permute.xlu1 %675  ;;  %v688_v53 = vpop.permute.xlu0 %687 }
 0x20c   : > { %v678_v52 = vmul.f32 %v676_v51, %v672_v50  ;;  %v690_v57 = vmul.f32 %v688_v53, %v672_v50  ;;  %v887_v17 = vmul.f32 %v872_v16, %v676_v51  ;;  %v920_v21 = vmul.f32 %v872_v16, %v688_v53 }
 0x20e   : > { %v679_v55 = vpack.c.bf16 %v678_v52, %v678_v52  ;;  %v691_v61 = vpack.c.bf16 %v690_v57, %v690_v57  ;;  %v888_v19 = vrot.slane %v887_v17, 4  ;;  %v921_v24 = vrot.slane %v920_v21, 4 }
 0x210   : > { %v682_v54 = vpop.permute.xlu1 %681  ;;  %v704_v60 = vsel %vm702_vm4, %v679_v55, 0  ;;  %v710_v3 = vsel %vm702_vm4, %v691_v61, 0  ;;  %v889_v22 = vadd.f32 %v888_v19, %v887_v17  ;;  %v922_v27 = vadd.f32 %v921_v24, %v920_v21 }
 0x211   : > { %v684_v56 = vmul.f32 %v682_v54, %v672_v50  ;;  %v904_v18 = vmul.f32 %v872_v16, %v682_v54 }
 0x212   : > { %v890_v26 = vrot.slane %v889_v22, 2  ;;  %v923_v31 = vrot.slane %v922_v27, 2 }
 0x213   : > { %v685_v58 = vpack.c.bf16 %v684_v56, %v684_v56  ;;  %v905_v20 = vrot.slane %v904_v18, 4 }
 0x214   : > { %v891_v30 = vadd.f32 %v890_v26, %v889_v22  ;;  %v924_v36 = vadd.f32 %v923_v31, %v922_v27 }
 0x215   : > { %1099 = vmatprep.subr.msk.bf16.mxu0 %vm702_vm4, %v685_v58  ;;  %v694_v59 = vpop.permute.xlu1 %693  ;;  %v906_v23 = vadd.f32 %v905_v20, %v904_v18 }
 0x216   : > { %v696_v62 = vmul.f32 %v694_v59, %v672_v50  ;;  %730 = vmatpush1.bf16.msra.mxu0 %v704_v60  ;;  %v936_v25 = vmul.f32 %v872_v16, %v694_v59  ;;  %v892_v34 = vrot.slane %v891_v30, 1  ;;  %v925_v41 = vrot.slane %v924_v36, 1 }
 0x217   : > { %1137 = vmatprep.subr.mxu0 %v1261_v10 }
 0x218   : > { %v697_v1 = vpack.c.bf16 %v696_v62, %v696_v62  ;;  %v937_v28 = vrot.slane %v936_v25, 4  ;;  %v893_v38 = vadd.f32 %v892_v34, %v891_v30  ;;  %v926_v51 = vadd.f32 %v925_v41, %v924_v36 }
 0x219   : > { %1100 = vmatmul.mubr.msk.bf16.vlgmr.msra.gmra.mxu0 %vm698_vm5, %v670_v63 }
 0x21a   : > { %1101 = vmatprep.subr.msk.bf16.mxu1 %vm702_vm4, %v697_v1  ;;  %1138 = vmatpush3.msra.mxu0 %v669_v46  ;;  %v938_v32 = vadd.f32 %v937_v28, %v936_v25 }
 0x21b   : > { %771 = vmatpush1.bf16.msra.mxu1 %v710_v3  ;;  %1139 = vmatprep.mubr.msk.f32.mxu0 %vm1262_vm1, %v1261_v10 }
 0x21c   : > { %v939_v35 = vrot.slane %v938_v32, 2 }
 0x21e   : > { %1102 = vmatmul.mubr.msk.bf16.vlgmr.msra.gmra.mxu1 %vm698_vm5, %v670_v63  ;;  %v940_v42 = vadd.f32 %v939_v35, %v938_v32 }
 0x220   : > { %v941_v53 = vrot.slane %v940_v42, 1 }
 0x221   : > { %1140 = vmatmul.mubr.msk.f32.vlgmr.msra.gmra.mxu0 %vm698_vm5, %v798_v4 }
 0x222   : > { %v942_v59 = vadd.f32 %v941_v53, %v940_v42 }
 0x2d9   : > { %v749_v5 = vpop.f32.mrf.mxu0 }
 0x2da   : > { %v900_v43 = vmul.f32 2.0, %v749_v5 }
 0x2db   : > { %v751_v6 = vpop.f32.mrf.mxu0 }
 0x2dc   : > { %v916_v44 = vmul.f32 2.0, %v751_v6 }
 0x2dd   : > { %v753_v7 = vpop.f32.mrf.mxu0 }
 0x2de   : > { %v790_v9 = vpop.f32.mrf.mxu1 }
 0x2df   : > { %v754_v8 = vpop.f32.mrf.mxu0  ;;  %v932_v54 = vmul.f32 2.0, %v790_v9 }
 0x2e0   : > { %v1442_v12 = vpop.f32.mrf.mxu1 }
 0x2e1   : > { %v868_v11 = vpop.f32.mrf.mxu0  ;;  %v948_v62 = vmul.f32 2.0, %v1442_v12 }
 0x2e2   : > { %912 = vperm.xlu0 %1193, %v868_v11   ;;  %896 = vperm.xlu1 %1192, %v868_v11   ;;  %v794_v10 = vpop.f32.mrf.mxu1 }
 0x2e3   : > { %v1141_v13 = vpop.f32.mrf.mxu0 }
 0x2e4   : > { %v795_v15 = vpop.f32.mrf.mxu1 }
 0x2e6   : > { %1196 = vset.pattern.permute.xlu0 %v1260_v0  ;;  %1194 = vset.pattern.permute.xlu1 %v1263_v37  ;;  %v907_v0 = vrot.slane %v906_v23, 2 }
 0x2e7   : > { %877 = vperm.xlu0 %1196, %v873_v14   ;;  %928 = vperm.xlu1 %1194, %v868_v11  }
 0x2e8   : > { %v908_v29 = vadd.f32 %v907_v0, %v906_v23 }
 0x2ea   : > { %v909_v33 = vrot.slane %v908_v29, 1 }
 0x2eb   : > { %1195 = vset.pattern.permute.xlu1 %v1265_v48  ;;  %1197 = vset.pattern.permute.xlu0 %v1265_v48 }
 0x2ec   : > { %944 = vperm.xlu1 %1195, %v868_v11   ;;  %v910_v37 = vadd.f32 %v909_v33, %v908_v29 }
 0x35d   : > { %v913_v39 = vpop.permute.xlu0 %912  ;;  %v897_v40 = vpop.permute.xlu1 %896 }
 0x35e   : > { %v915_v45 = vadd.f32 %v913_v39, %v910_v37  ;;  %v899_v46 = vadd.f32 %v897_v40, %v893_v38 }
 0x360   : > { %v917_v47 = vsub.f32 %v915_v45, %v916_v44  ;;  %v901_v48 = vsub.f32 %v899_v46, %v900_v43 }
 0x362   : > { %v878_v50 = vpop.permute.xlu0 %877  ;;  %v929_v52 = vpop.permute.xlu1 %928 }
 0x363   : > { %vm886_vm6 = vcmp.eq.f32.partialorder %v878_v50, %v1104_v49  ;;  %v931_v57 = vadd.f32 %v929_v52, %v926_v51 }
 0x364   : > { %v902_v55 = vsel %vm886_vm6, %v901_v48, 100.0  ;;  %v918_v56 = vsel %vm886_vm6, %v917_v47, 100.0 }
 0x365   : > { %v1112_v58 = vpack.c.bf16 %v918_v56, %v902_v55  ;;  %v933_v61 = vsub.f32 %v931_v57, %v932_v54 }
 0x367   : > { %v945_v60 = vpop.permute.xlu1 %944  ;;  %964 = vst [vmem:[%s427_s29] sm:$0xff] %v1112_v58  ;;  %v934_v2 = vsel %vm886_vm6, %v933_v61, 100.0 }
 0x368   : > { %v947_v63 = vadd.f32 %v945_v60, %v942_v59 }
 0x36a   : > { %v949_v1 = vsub.f32 %v947_v63, %v948_v62 }
 0x36c   : > { %v950_v3 = vsel %vm886_vm6, %v949_v1, 100.0 }
 0x36d   : > { %v1113_v4 = vpack.c.bf16 %v950_v3, %v934_v2 }
 0x36f   : > { %965 = vst [vmem:[%s427_s29 + $0x8] sm:$0xff] %v1113_v4 }
 0x370   : > { %1211 = shalt.err (!%p1208_p3)
}
 0x371   : > { %s1212_s15 = scalar_lea.hbm %s979_s30, 256  ;;  %s1216_s13 = scalar_lea.hbm %s1504_s11, 512 }
 0x372   : > { %p1213_p4 = scmp.ne.s32.totalorder %s979_s30, %s1212_s15  ;;  %p1217_p9 = scmp.lt.s32.totalorder %s979_s30, %s1504_s11 }
 0x373   : > { %p1218_p10 = scmp.lt.s32.totalorder %s1216_s13, %s1212_s15 }
 0x374   : > { %p1214_p7 = pnand %p1213_p4, %p1365_p5 }
 0x375   : > { %p1219_p11 = por %p1218_p10, %p1217_p9 }
 0x376   : > { %p1215_p8 = pneg %p1214_p7 }
 0x378   : > { %p1220_p12 = pnand %p1219_p11, %p1215_p8 }
 0x37a   : > { %1223 = shalt.err (!%p1220_p12)
}
 0x37b   : > { %1142 = dma.vmem_to_hbm [thread:$0]  (%p1365_p5), %s982_s14, 256, %s979_s30, %s967_s22  }
 0x37c PF: > { %p1148_p13 = scmp.ge.s32.totalorder %s1258_s20, 2  ;;  %s993_s0 = sand.u32 1, %s1246_s17  }
 0x37d   : > { %s994_s24 = scalar_lea.sflag [#allocation4], %s993_s0 }
 0x37e   : > { %p1145_p0 = pnand %p1148_p13, %p1369_p6 }
 0x380   : > { %p1146_p1 = pneg %p1145_p0 }
 0x382   : > { %1241 = dma.done.wait (%p1146_p1), %s994_s24, 256  }
 0x383   : > { %1243 = vsyncadd (%p1146_p1), %s994_s24, 4294967040  ;;  %p21_p2 = scmp.ge.s32.totalorder %s1352_s23, 4   ;;  %s1511_s17 = smov %s1250_s18 }
 0x384   : > { %s1512_s18 = smov %s1254_s19  ;;  %s1513_s19 = smov %s1363_s26 }
 0x385   : > { %s1514_s20 = smov %s1352_s23  ;;  %23 = sbr.rel (!%p21_p2) target bundleno = 6 (0x6), region = 111 }
 0x38a   :  { %999 = vsyncpa [#allocation4], 1 }
 0x38b   :  { %1001 = vsyncpa [#allocation4 + $0x1], 1 }

</bundles_post_ra>
